<compile_context>
chip_gen: v7x
topology: tpu7x:2x2x1
jax: 0.10.0
libtpu: 0.0.40
codegen_flags: <defaults>
</compile_context>

<pallas_src>
import functools

import jax
import jax.numpy as jnp
from jax.experimental import pallas as pl
from jax.experimental.pallas import tpu as pltpu


def _round_up(v, m):
    return (v + m - 1) // m * m


# ------------------------------ fused kernel -------------------------------- #

def _basic_block_kernel(xa_ref, mask_ref, wa_ref, ba_ref, wb_ref, bb_ref,
                        *rest, s, Cpad_in, Cpad_out, Wp2, Wpb, L, has_down):
    """Whole BasicBlock for one batch element; everything stays in VMEM.

    xa_ref  : (s*s*Cpad_in, PLa) bf16  conv-padded input, space-to-depth'd by
              `s`, planes flattened (phase-major / channel-minor rows).
    mask_ref: (1, L) f32               1.0 at valid lanes p = i*Wpb + j.
    wa_ref  : (Cpad_out, 9*Cpad_in)  bf16  folded conv_a+BN weight (tap-major).
    ba_ref  : (Cpad_out, 1) f32
    wb_ref  : (Cpad_out, 9*Cpad_out) bf16  folded conv_b+BN weight.
    bb_ref  : (Cpad_out, 1) f32
    rest    : [wd_ref (Cpad_out, Cpad_in) bf16, bd_ref (Cpad_out, 1) f32] if
              has_down, then o_ref (Cpad_out, L) f32, and VMEM scratches
              pa (9*Cpad_in, L) bf16, hb (Cpad_out, PLb) bf16,
              pb (9*Cpad_out, L) bf16.
    """
    if has_down:
        wd_ref, bd_ref, o_ref, pa_ref, hb_ref, pb_ref = rest
    else:
        o_ref, pa_ref, hb_ref, pb_ref = rest

    taps = [(kh, kw) for kh in range(3) for kw in range(3)]

    # -- conv_a: 3x3 / stride s (stride already folded into the phase layout) --
    for t, (kh, kw) in enumerate(taps):
        ph = (kh % s) * s + (kw % s)
        off = (kh // s) * Wp2 + (kw // s)
        pa_ref[t * Cpad_in:(t + 1) * Cpad_in, :] = \
            xa_ref[ph * Cpad_in:(ph + 1) * Cpad_in, off:off + L]
    h = jnp.dot(wa_ref[...], pa_ref[...], preferred_element_type=jnp.float32)
    h = jnp.maximum(h + ba_ref[...], 0.0)

    # -- repack h into a zero-padded plane for conv_b (bf16, stays in VMEM) ----
    hb_ref[...] = jnp.zeros_like(hb_ref)
    hb_ref[:, Wpb + 1:Wpb + 1 + L] = (h * mask_ref[...]).astype(jnp.bfloat16)

    # -- conv_b: 3x3 / stride 1 -------------------------------------------------
    for t, (kh, kw) in enumerate(taps):
        off = kh * Wpb + kw
        pb_ref[t * Cpad_out:(t + 1) * Cpad_out, :] = hb_ref[:, off:off + L]
    acc = jnp.dot(wb_ref[...], pb_ref[...], preferred_element_type=jnp.float32)
    acc = acc + bb_ref[...]

    # -- shortcut (1x1 stride-s conv + BN, or identity) + residual add ----------
    phd = (1 % s) * s + (1 % s)
    od = (1 // s) * Wp2 + (1 // s)
    rslab = xa_ref[phd * Cpad_in:(phd + 1) * Cpad_in, od:od + L]
    if has_down:
        acc = acc + jnp.dot(wd_ref[...], rslab,
                            preferred_element_type=jnp.float32) + bd_ref[...]
    else:
        acc = acc + rslab.astype(jnp.float32)

    o_ref[...] = acc


# ------------------------------ Pallas wrapper ------------------------------- #

def _fold_conv3x3(w, cin_pad, cout_pad):
    """(Cout, Cin, 3, 3) conv weight -> (cout_pad, 9*cin_pad) tap-major bf16."""
    cout, cin = w.shape[:2]
    wt = jnp.transpose(w, (0, 2, 3, 1))                        # (Cout, kh, kw, Cin)
    wt = jnp.pad(wt, ((0, cout_pad - cout), (0, 0), (0, 0), (0, cin_pad - cin)))
    return wt.reshape(cout_pad, 9 * cin_pad).astype(jnp.bfloat16)


def _pad_bias(b, cout_pad):
    return jnp.pad(b, (0, cout_pad - b.shape[0])).reshape(cout_pad, 1).astype(jnp.float32)


def basic_block_forward(x, params):
    """x: (N, Cin, H, W) f32 -> (N, Cout, Ho, Wo) f32 (NCHW throughout)."""
    N, Cin, H, W = x.shape
    s = params['stride']
    Cout = params['wa'].shape[0]
    has_down = params['has_down']
    if not has_down:
        assert Cin == Cout, "identity shortcut needs input_dim == out_channels"

    # ---------------- static geometry (Python ints) ----------------
    Ho = (H + 2 - 3) // s + 1
    Wo = (W + 2 - 3) // s + 1
    Wpb = Wo + 2                          # conv_b padded-plane width
    Wp2 = Wpb                             # phase-plane width (== Wpb by padding)
    Hp2 = -(-(H + 2) // s)                # phase-plane height
    Cpad_in = _round_up(Cin, 16)          # bf16 packs 16 rows per sublane group
    Cpad_out = _round_up(Cout, 16)
    L = _round_up(Ho * Wpb, 128)          # lane-dense (>=128) output width
    off_a_max = ((3 - 1) // s) * (Wp2 + 1)
    od = (1 // s) * (Wp2 + 1)
    PLa = _round_up(max(max(off_a_max, od) + L, Hp2 * Wp2), 128)
    PLb = _round_up(max(2 * Wpb + 2 + L, (Ho + 2) * Wpb), 128)

    # ------- O(|x|) prep: conv pad + space-to-depth + flatten (bf16) ----------
    xp = jnp.pad(x, ((0, 0), (0, 0), (1, 1), (1, 1)))
    xp = jnp.pad(xp, ((0, 0), (0, 0),
                      (0, s * Hp2 - (H + 2)), (0, s * Wp2 - (W + 2))))
    xs = jnp.transpose(xp.reshape(N, Cin, Hp2, s, Wp2, s), (0, 3, 5, 1, 2, 4))
    xs = xs.reshape(N, s * s, Cin, Hp2 * Wp2)
    xs = jnp.pad(xs, ((0, 0), (0, 0), (0, Cpad_in - Cin), (0, PLa - Hp2 * Wp2)))
    xa = xs.reshape(N, s * s * Cpad_in, PLa).astype(jnp.bfloat16)

    # 1.0 on lanes p = i*Wpb + j that map to a real output pixel.
    p_idx = jnp.arange(L, dtype=jnp.int32)
    mask = (((p_idx // Wpb) < Ho) & ((p_idx % Wpb) < Wo))
    mask = mask.astype(jnp.float32).reshape(1, L)

    wa_t = _fold_conv3x3(params['wa'], Cpad_in, Cpad_out)
    wb_t = _fold_conv3x3(params['wb'], Cpad_out, Cpad_out)
    ba = _pad_bias(params['ba'], Cpad_out)
    bb = _pad_bias(params['bb'], Cpad_out)

    args = [xa, mask, wa_t, ba, wb_t, bb]
    in_specs = [
        pl.BlockSpec((None, s * s * Cpad_in, PLa), lambda n: (n, 0, 0)),
        pl.BlockSpec((1, L), lambda n: (0, 0)),
        pl.BlockSpec((Cpad_out, 9 * Cpad_in), lambda n: (0, 0)),
        pl.BlockSpec((Cpad_out, 1), lambda n: (0, 0)),
        pl.BlockSpec((Cpad_out, 9 * Cpad_out), lambda n: (0, 0)),
        pl.BlockSpec((Cpad_out, 1), lambda n: (0, 0)),
    ]
    if has_down:
        wd = jnp.zeros((Cpad_out, Cpad_in), jnp.float32)
        wd = wd.at[:Cout, :Cin].set(params['wd'].reshape(Cout, Cin))
        args += [wd.astype(jnp.bfloat16), _pad_bias(params['bd'], Cpad_out)]
        in_specs += [pl.BlockSpec((Cpad_out, Cpad_in), lambda n: (0, 0)),
                     pl.BlockSpec((Cpad_out, 1), lambda n: (0, 0))]

    kernel = functools.partial(
        _basic_block_kernel, s=s, Cpad_in=Cpad_in, Cpad_out=Cpad_out,
        Wp2=Wp2, Wpb=Wpb, L=L, has_down=has_down)

    out = pl.pallas_call(
        kernel,
        out_shape=jax.ShapeDtypeStruct((N, Cpad_out, L), jnp.float32),
        grid=(N,),                       # N>=2 parallel steps -> both v7x TCs busy
        in_specs=in_specs,
        out_specs=pl.BlockSpec((None, Cpad_out, L), lambda n: (n, 0, 0)),
        scratch_shapes=[pltpu.VMEM((9 * Cpad_in, L), jnp.bfloat16),
                        pltpu.VMEM((Cpad_out, PLb), jnp.bfloat16),
                        pltpu.VMEM((9 * Cpad_out, L), jnp.bfloat16)],
        compiler_params=pltpu.CompilerParams(
            dimension_semantics=("parallel",)),
    )(*args)

    # lane p = i*Wpb + j  ->  (N, Cout, Ho, Wo); padded channels/lanes dropped.
    return out[:, :Cout, :Ho * Wpb].reshape(N, Cout, Ho, Wpb)[..., :Wo]


# ------------------------------- parameters --------------------------------- #

def _fold_conv_bn(key, cin, cout, k, eps=1e-5):
    """Conv2d(bias=True) followed by BatchNorm2d (eval mode), folded."""
    ks = jax.random.split(key, 6)
    w = jax.random.normal(ks[0], (cout, cin, k, k), jnp.float32) * 0.1   # OIHW
    b = jax.random.normal(ks[1], (cout,), jnp.float32) * 0.1
    gamma = jax.random.uniform(ks[2], (cout,), jnp.float32, minval=0.5, maxval=1.5)
    beta = jax.random.normal(ks[3], (cout,), jnp.float32) * 0.1
    mean = jax.random.normal(ks[4], (cout,), jnp.float32) * 0.1
    var = jax.random.uniform(ks[5], (cout,), jnp.float32, minval=0.5, maxval=1.5)
    scale = gamma / jnp.sqrt(var + eps)
    return w * scale[:, None, None, None], (b - mean) * scale + beta


def make_params(key, input_dim, out_channels, stride):
    ka, kb, kd = jax.random.split(key, 3)
    wa, ba = _fold_conv_bn(ka, input_dim, out_channels, 3)
    wb, bb = _fold_conv_bn(kb, out_channels, out_channels, 3)
    # NOTE: the reference module literally tests `out_channels != 4` (not
    # `!= input_dim`); kept as-is to match its semantics. The identity path
    # additionally requires input_dim == out_channels (asserted in forward).
    p = dict(stride=stride,
             has_down=(stride != 1 or out_channels != 4),
             wa=wa, ba=ba, wb=wb, bb=bb)
    if p['has_down']:
        wd, bd = _fold_conv_bn(kd, input_dim, out_channels, 1)
        p['wd'], p['bd'] = wd, bd
    return p


# ------------------------------- reference ----------------------------------- #

def reference_forward(x, params):
    """Pure XLA reference (same bf16 operand rounding, f32 accumulation)."""
    s = params['stride']
    bf = jnp.bfloat16

    def conv(inp, w, b, st, pad):
        y = jax.lax.conv_general_dilated(
            inp.astype(bf), w.astype(bf),
            window_strides=(st, st), padding=[(pad, pad), (pad, pad)],
            dimension_numbers=('NCHW', 'OIHW', 'NCHW'),
            preferred_element_type=jnp.float32)
        return y + b[None, :, None, None]

    h = jax.nn.relu(conv(x, params['wa'], params['ba'], s, 1))
    y = conv(h, params['wb'], params['bb'], 1, 1)
    if params['has_down']:
        r = conv(x, params['wd'], params['bd'], s, 0)
    else:
        r = x.astype(bf).astype(jnp.float32)   # kernel adds the bf16 input slab
    return y + r


# --------------------------------- main -------------------------------------- #

if __name__ == "__main__":
    key = jax.random.PRNGKey(0)
    kx, kp1, kp2 = jax.random.split(key, 3)
    x = jax.random.normal(kx, (2, 4, 16, 16), jnp.float32)

    configs = [
        (4, 8, 2),   # (input_dim, out_channels, stride): conv-downsample shortcut
        (4, 4, 1),   # identity shortcut
    ]
    for kp, (cin, cout, stride) in zip((kp1, kp2), configs):
        params = make_params(kp, cin, cout, stride)
        fwd = jax.jit(lambda inp, p=params: basic_block_forward(inp, p))
        out = jax.block_until_ready(fwd(x))
        ref = reference_forward(x, params)

        assert out.shape == ref.shape, (out.shape, ref.shape)
        assert bool(jnp.all(jnp.isfinite(out)))
        err = float(jnp.max(jnp.abs(out - ref)))
        tol = 1e-2 * (1.0 + float(jnp.max(jnp.abs(ref))))
        assert err < tol, (err, tol)

    print("KERNEL_OK")
</pallas_src>

<mosaic_0001>
module attributes {stable_mosaic.version = 11 : i64} {
  func.func @_basic_block_kernel(%arg0: i32, %arg1: memref<1x64x256xbf16, #tpu.memory_space<vmem>>, %arg2: memref<1x128xf32, #tpu.memory_space<vmem>>, %arg3: memref<16x144xbf16, #tpu.memory_space<vmem>>, %arg4: memref<16x1xf32, #tpu.memory_space<vmem>>, %arg5: memref<16x144xbf16, #tpu.memory_space<vmem>>, %arg6: memref<16x1xf32, #tpu.memory_space<vmem>>, %arg7: memref<16x16xbf16, #tpu.memory_space<vmem>>, %arg8: memref<16x1xf32, #tpu.memory_space<vmem>>, %arg9: memref<1x16x128xf32, #tpu.memory_space<vmem>>, %arg10: memref<144x128xbf16, #tpu.memory_space<vmem>>, %arg11: memref<16x256xbf16, #tpu.memory_space<vmem>>, %arg12: memref<144x128xbf16, #tpu.memory_space<vmem>>) attributes {dimension_semantics = [#tpu.dimension_semantics<parallel>], iteration_bounds = array<i64: 2>, scalar_prefetch = 0 : i64, scratch_operands = 3 : i64, tpu.core_type = #tpu.core_type<tc>, window_params = [{transform_indices = @transform_0, window_bounds = array<i64: 1, 64, 256>}, {pipeline_mode = #tpu.pipeline_mode<synchronous>, transform_indices = @transform_1, window_bounds = array<i64: 1, 128>}, {pipeline_mode = #tpu.pipeline_mode<synchronous>, transform_indices = @transform_2, window_bounds = array<i64: 16, 144>}, {pipeline_mode = #tpu.pipeline_mode<synchronous>, transform_indices = @transform_3, window_bounds = array<i64: 16, 1>}, {pipeline_mode = #tpu.pipeline_mode<synchronous>, transform_indices = @transform_4, window_bounds = array<i64: 16, 144>}, {pipeline_mode = #tpu.pipeline_mode<synchronous>, transform_indices = @transform_5, window_bounds = array<i64: 16, 1>}, {pipeline_mode = #tpu.pipeline_mode<synchronous>, transform_indices = @transform_6, window_bounds = array<i64: 16, 16>}, {pipeline_mode = #tpu.pipeline_mode<synchronous>, transform_indices = @transform_7, window_bounds = array<i64: 16, 1>}, {transform_indices = @transform_8, window_bounds = array<i64: 1, 16, 128>}]} {
    %c0 = arith.constant 0 : index
    %c0_0 = arith.constant 0 : index
    %c0_1 = arith.constant 0 : index
    %0 = vector.load %arg1[%c0, %c0_0, %c0_1] : memref<1x64x256xbf16, #tpu.memory_space<vmem>>, vector<1x16x128xbf16>
    %1 = vector.shape_cast %0 : vector<1x16x128xbf16> to vector<16x128xbf16>
    %c0_2 = arith.constant 0 : index
    %c0_3 = arith.constant 0 : index
    %2 = vector.load %arg10[%c0_2, %c0_3] : memref<144x128xbf16, #tpu.memory_space<vmem>>, vector<16x128xbf16>
    tpu.vector_store %arg10[%c0_2, %c0_3], %1 {strides = array<i32>} : memref<144x128xbf16, #tpu.memory_space<vmem>>, vector<16x128xbf16>,
    %c0_4 = arith.constant 0 : index
    %c16 = arith.constant 16 : index
    %c0_5 = arith.constant 0 : index
    %3 = vector.load %arg1[%c0_4, %c16, %c0_5] : memref<1x64x256xbf16, #tpu.memory_space<vmem>>, vector<1x16x128xbf16>
    %4 = vector.shape_cast %3 : vector<1x16x128xbf16> to vector<16x128xbf16>
    %c16_6 = arith.constant 16 : index
    %c0_7 = arith.constant 0 : index
    %5 = vector.load %arg10[%c16_6, %c0_7] : memref<144x128xbf16, #tpu.memory_space<vmem>>, vector<16x128xbf16>
    tpu.vector_store %arg10[%c16_6, %c0_7], %4 {strides = array<i32>} : memref<144x128xbf16, #tpu.memory_space<vmem>>, vector<16x128xbf16>,
    %c0_8 = arith.constant 0 : index
    %c0_9 = arith.constant 0 : index
    %c1 = arith.constant 1 : index
    %6 = vector.load %arg1[%c0_8, %c0_9, %c1] : memref<1x64x256xbf16, #tpu.memory_space<vmem>>, vector<1x16x128xbf16>
    %7 = vector.shape_cast %6 : vector<1x16x128xbf16> to vector<16x128xbf16>
    %c32 = arith.constant 32 : index
    %c0_10 = arith.constant 0 : index
    %8 = vector.load %arg10[%c32, %c0_10] : memref<144x128xbf16, #tpu.memory_space<vmem>>, vector<16x128xbf16>
    tpu.vector_store %arg10[%c32, %c0_10], %7 {strides = array<i32>} : memref<144x128xbf16, #tpu.memory_space<vmem>>, vector<16x128xbf16>,
    %c0_11 = arith.constant 0 : index
    %c32_12 = arith.constant 32 : index
    %c0_13 = arith.constant 0 : index
    %9 = vector.load %arg1[%c0_11, %c32_12, %c0_13] : memref<1x64x256xbf16, #tpu.memory_space<vmem>>, vector<1x16x128xbf16>
    %10 = vector.shape_cast %9 : vector<1x16x128xbf16> to vector<16x128xbf16>
    %c48 = arith.constant 48 : index
    %c0_14 = arith.constant 0 : index
    %11 = vector.load %arg10[%c48, %c0_14] : memref<144x128xbf16, #tpu.memory_space<vmem>>, vector<16x128xbf16>
    tpu.vector_store %arg10[%c48, %c0_14], %10 {strides = array<i32>} : memref<144x128xbf16, #tpu.memory_space<vmem>>, vector<16x128xbf16>,
    %c0_15 = arith.constant 0 : index
    %c48_16 = arith.constant 48 : index
    %c0_17 = arith.constant 0 : index
    %12 = vector.load %arg1[%c0_15, %c48_16, %c0_17] : memref<1x64x256xbf16, #tpu.memory_space<vmem>>, vector<1x16x128xbf16>
    %13 = vector.shape_cast %12 : vector<1x16x128xbf16> to vector<16x128xbf16>
    %c64 = arith.constant 64 : index
    %c0_18 = arith.constant 0 : index
    %14 = vector.load %arg10[%c64, %c0_18] : memref<144x128xbf16, #tpu.memory_space<vmem>>, vector<16x128xbf16>
    tpu.vector_store %arg10[%c64, %c0_18], %13 {strides = array<i32>} : memref<144x128xbf16, #tpu.memory_space<vmem>>, vector<16x128xbf16>,
    %c0_19 = arith.constant 0 : index
    %c32_20 = arith.constant 32 : index
    %c1_21 = arith.constant 1 : index
    %15 = vector.load %arg1[%c0_19, %c32_20, %c1_21] : memref<1x64x256xbf16, #tpu.memory_space<vmem>>, vector<1x16x128xbf16>
    %16 = vector.shape_cast %15 : vector<1x16x128xbf16> to vector<16x128xbf16>
    %c80 = arith.constant 80 : index
    %c0_22 = arith.constant 0 : index
    %17 = vector.load %arg10[%c80, %c0_22] : memref<144x128xbf16, #tpu.memory_space<vmem>>, vector<16x128xbf16>
    tpu.vector_store %arg10[%c80, %c0_22], %16 {strides = array<i32>} : memref<144x128xbf16, #tpu.memory_space<vmem>>, vector<16x128xbf16>,
    %c0_23 = arith.constant 0 : index
    %c0_24 = arith.constant 0 : index
    %c10 = arith.constant 10 : index
    %18 = vector.load %arg1[%c0_23, %c0_24, %c10] : memref<1x64x256xbf16, #tpu.memory_space<vmem>>, vector<1x16x128xbf16>
    %19 = vector.shape_cast %18 : vector<1x16x128xbf16> to vector<16x128xbf16>
    %c96 = arith.constant 96 : index
    %c0_25 = arith.constant 0 : index
    %20 = vector.load %arg10[%c96, %c0_25] : memref<144x128xbf16, #tpu.memory_space<vmem>>, vector<16x128xbf16>
    tpu.vector_store %arg10[%c96, %c0_25], %19 {strides = array<i32>} : memref<144x128xbf16, #tpu.memory_space<vmem>>, vector<16x128xbf16>,
    %c0_26 = arith.constant 0 : index
    %c16_27 = arith.constant 16 : index
    %c10_28 = arith.constant 10 : index
    %21 = vector.load %arg1[%c0_26, %c16_27, %c10_28] : memref<1x64x256xbf16, #tpu.memory_space<vmem>>, vector<1x16x128xbf16>
    %22 = vector.shape_cast %21 : vector<1x16x128xbf16> to vector<16x128xbf16>
    %c112 = arith.constant 112 : index
    %c0_29 = arith.constant 0 : index
    %23 = vector.load %arg10[%c112, %c0_29] : memref<144x128xbf16, #tpu.memory_space<vmem>>, vector<16x128xbf16>
    tpu.vector_store %arg10[%c112, %c0_29], %22 {strides = array<i32>} : memref<144x128xbf16, #tpu.memory_space<vmem>>, vector<16x128xbf16>,
    %c0_30 = arith.constant 0 : index
    %c0_31 = arith.constant 0 : index
    %c11 = arith.constant 11 : index
    %24 = vector.load %arg1[%c0_30, %c0_31, %c11] : memref<1x64x256xbf16, #tpu.memory_space<vmem>>, vector<1x16x128xbf16>
    %25 = vector.shape_cast %24 : vector<1x16x128xbf16> to vector<16x128xbf16>
    %c128 = arith.constant 128 : index
    %c0_32 = arith.constant 0 : index
    %26 = vector.load %arg10[%c128, %c0_32] : memref<144x128xbf16, #tpu.memory_space<vmem>>, vector<16x128xbf16>
    tpu.vector_store %arg10[%c128, %c0_32], %25 {strides = array<i32>} : memref<144x128xbf16, #tpu.memory_space<vmem>>, vector<16x128xbf16>,
    %c0_33 = arith.constant 0 : index
    %c0_34 = arith.constant 0 : index
    %27 = vector.load %arg3[%c0_33, %c0_34] : memref<16x144xbf16, #tpu.memory_space<vmem>>, vector<16x144xbf16>
    %c0_35 = arith.constant 0 : index
    %c0_36 = arith.constant 0 : index
    %28 = vector.load %arg10[%c0_35, %c0_36] : memref<144x128xbf16, #tpu.memory_space<vmem>>, vector<144x128xbf16>
    %cst = arith.constant dense<0.000000e+00> : vector<16x128xf32>
    %29 = tpu.matmul %27, %28, %cst {dimension_numbers = #tpu.dot_dimension_numbers<[1], [0], [0], [1], [0, 0, 1, 1], [], []>} : vector<16x144xbf16>, vector<144x128xbf16>, vector<16x128xf32> -> vector<16x128xf32>
    %c0_37 = arith.constant 0 : index
    %c0_38 = arith.constant 0 : index
    %30 = vector.load %arg4[%c0_37, %c0_38] : memref<16x1xf32, #tpu.memory_space<vmem>>, vector<16x1xf32>
    %31 = vector.broadcast %30 : vector<16x1xf32> to vector<16x128xf32>
    %32 = arith.addf %29, %31 : vector<16x128xf32>
    %cst_39 = arith.constant 0.000000e+00 : f32
    %33 = vector.broadcast %cst_39 : f32 to vector<16x128xf32>
    %34 = arith.maximumf %32, %33 : vector<16x128xf32>
    %cst_40 = arith.constant 0.000000e+00 : bf16
    %35 = vector.broadcast %cst_40 : bf16 to vector<16x256xbf16>
    %c0_41 = arith.constant 0 : index
    %c0_42 = arith.constant 0 : index
    %36 = vector.load %arg11[%c0_41, %c0_42] : memref<16x256xbf16, #tpu.memory_space<vmem>>, vector<16x256xbf16>
    tpu.vector_store %arg11[%c0_41, %c0_42], %35 {strides = array<i32>} : memref<16x256xbf16, #tpu.memory_space<vmem>>, vector<16x256xbf16>,
    %c0_43 = arith.constant 0 : index
    %c0_44 = arith.constant 0 : index
    %37 = vector.load %arg2[%c0_43, %c0_44] : memref<1x128xf32, #tpu.memory_space<vmem>>, vector<1x128xf32>
    %38 = vector.broadcast %37 : vector<1x128xf32> to vector<16x128xf32>
    %39 = arith.mulf %34, %38 : vector<16x128xf32>
    %40 = arith.truncf %39 : vector<16x128xf32> to vector<16x128xbf16>
    %c0_45 = arith.constant 0 : index
    %c11_46 = arith.constant 11 : index
    %41 = vector.load %arg11[%c0_45, %c11_46] : memref<16x256xbf16, #tpu.memory_space<vmem>>, vector<16x128xbf16>
    tpu.vector_store %arg11[%c0_45, %c11_46], %40 {strides = array<i32>} : memref<16x256xbf16, #tpu.memory_space<vmem>>, vector<16x128xbf16>,
    %c0_47 = arith.constant 0 : index
    %c0_48 = arith.constant 0 : index
    %42 = vector.load %arg11[%c0_47, %c0_48] : memref<16x256xbf16, #tpu.memory_space<vmem>>, vector<16x128xbf16>
    %c0_49 = arith.constant 0 : index
    %c0_50 = arith.constant 0 : index
    %43 = vector.load %arg12[%c0_49, %c0_50] : memref<144x128xbf16, #tpu.memory_space<vmem>>, vector<16x128xbf16>
    tpu.vector_store %arg12[%c0_49, %c0_50], %42 {strides = array<i32>} : memref<144x128xbf16, #tpu.memory_space<vmem>>, vector<16x128xbf16>,
    %c0_51 = arith.constant 0 : index
    %c1_52 = arith.constant 1 : index
    %44 = vector.load %arg11[%c0_51, %c1_52] : memref<16x256xbf16, #tpu.memory_space<vmem>>, vector<16x128xbf16>
    %c16_53 = arith.constant 16 : index
    %c0_54 = arith.constant 0 : index
    %45 = vector.load %arg12[%c16_53, %c0_54] : memref<144x128xbf16, #tpu.memory_space<vmem>>, vector<16x128xbf16>
    tpu.vector_store %arg12[%c16_53, %c0_54], %44 {strides = array<i32>} : memref<144x128xbf16, #tpu.memory_space<vmem>>, vector<16x128xbf16>,
    %c0_55 = arith.constant 0 : index
    %c2 = arith.constant 2 : index
    %46 = vector.load %arg11[%c0_55, %c2] : memref<16x256xbf16, #tpu.memory_space<vmem>>, vector<16x128xbf16>
    %c32_56 = arith.constant 32 : index
    %c0_57 = arith.constant 0 : index
    %47 = vector.load %arg12[%c32_56, %c0_57] : memref<144x128xbf16, #tpu.memory_space<vmem>>, vector<16x128xbf16>
    tpu.vector_store %arg12[%c32_56, %c0_57], %46 {strides = array<i32>} : memref<144x128xbf16, #tpu.memory_space<vmem>>, vector<16x128xbf16>,
    %c0_58 = arith.constant 0 : index
    %c10_59 = arith.constant 10 : index
    %48 = vector.load %arg11[%c0_58, %c10_59] : memref<16x256xbf16, #tpu.memory_space<vmem>>, vector<16x128xbf16>
    %c48_60 = arith.constant 48 : index
    %c0_61 = arith.constant 0 : index
    %49 = vector.load %arg12[%c48_60, %c0_61] : memref<144x128xbf16, #tpu.memory_space<vmem>>, vector<16x128xbf16>
    tpu.vector_store %arg12[%c48_60, %c0_61], %48 {strides = array<i32>} : memref<144x128xbf16, #tpu.memory_space<vmem>>, vector<16x128xbf16>,
    %c0_62 = arith.constant 0 : index
    %c11_63 = arith.constant 11 : index
    %50 = vector.load %arg11[%c0_62, %c11_63] : memref<16x256xbf16, #tpu.memory_space<vmem>>, vector<16x128xbf16>
    %c64_64 = arith.constant 64 : index
    %c0_65 = arith.constant 0 : index
    %51 = vector.load %arg12[%c64_64, %c0_65] : memref<144x128xbf16, #tpu.memory_space<vmem>>, vector<16x128xbf16>
    tpu.vector_store %arg12[%c64_64, %c0_65], %50 {strides = array<i32>} : memref<144x128xbf16, #tpu.memory_space<vmem>>, vector<16x128xbf16>,
    %c0_66 = arith.constant 0 : index
    %c12 = arith.constant 12 : index
    %52 = vector.load %arg11[%c0_66, %c12] : memref<16x256xbf16, #tpu.memory_space<vmem>>, vector<16x128xbf16>
    %c80_67 = arith.constant 80 : index
    %c0_68 = arith.constant 0 : index
    %53 = vector.load %arg12[%c80_67, %c0_68] : memref<144x128xbf16, #tpu.memory_space<vmem>>, vector<16x128xbf16>
    tpu.vector_store %arg12[%c80_67, %c0_68], %52 {strides = array<i32>} : memref<144x128xbf16, #tpu.memory_space<vmem>>, vector<16x128xbf16>,
    %c0_69 = arith.constant 0 : index
    %c20 = arith.constant 20 : index
    %54 = vector.load %arg11[%c0_69, %c20] : memref<16x256xbf16, #tpu.memory_space<vmem>>, vector<16x128xbf16>
    %c96_70 = arith.constant 96 : index
    %c0_71 = arith.constant 0 : index
    %55 = vector.load %arg12[%c96_70, %c0_71] : memref<144x128xbf16, #tpu.memory_space<vmem>>, vector<16x128xbf16>
    tpu.vector_store %arg12[%c96_70, %c0_71], %54 {strides = array<i32>} : memref<144x128xbf16, #tpu.memory_space<vmem>>, vector<16x128xbf16>,
    %c0_72 = arith.constant 0 : index
    %c21 = arith.constant 21 : index
    %56 = vector.load %arg11[%c0_72, %c21] : memref<16x256xbf16, #tpu.memory_space<vmem>>, vector<16x128xbf16>
    %c112_73 = arith.constant 112 : index
    %c0_74 = arith.constant 0 : index
    %57 = vector.load %arg12[%c112_73, %c0_74] : memref<144x128xbf16, #tpu.memory_space<vmem>>, vector<16x128xbf16>
    tpu.vector_store %arg12[%c112_73, %c0_74], %56 {strides = array<i32>} : memref<144x128xbf16, #tpu.memory_space<vmem>>, vector<16x128xbf16>,
    %c0_75 = arith.constant 0 : index
    %c22 = arith.constant 22 : index
    %58 = vector.load %arg11[%c0_75, %c22] : memref<16x256xbf16, #tpu.memory_space<vmem>>, vector<16x128xbf16>
    %c128_76 = arith.constant 128 : index
    %c0_77 = arith.constant 0 : index
    %59 = vector.load %arg12[%c128_76, %c0_77] : memref<144x128xbf16, #tpu.memory_space<vmem>>, vector<16x128xbf16>
    tpu.vector_store %arg12[%c128_76, %c0_77], %58 {strides = array<i32>} : memref<144x128xbf16, #tpu.memory_space<vmem>>, vector<16x128xbf16>,
    %c0_78 = arith.constant 0 : index
    %c0_79 = arith.constant 0 : index
    %60 = vector.load %arg5[%c0_78, %c0_79] : memref<16x144xbf16, #tpu.memory_space<vmem>>, vector<16x144xbf16>
    %c0_80 = arith.constant 0 : index
    %c0_81 = arith.constant 0 : index
    %61 = vector.load %arg12[%c0_80, %c0_81] : memref<144x128xbf16, #tpu.memory_space<vmem>>, vector<144x128xbf16>
    %cst_82 = arith.constant dense<0.000000e+00> : vector<16x128xf32>
    %62 = tpu.matmul %60, %61, %cst_82 {dimension_numbers = #tpu.dot_dimension_numbers<[1], [0], [0], [1], [0, 0, 1, 1], [], []>} : vector<16x144xbf16>, vector<144x128xbf16>, vector<16x128xf32> -> vector<16x128xf32>
    %c0_83 = arith.constant 0 : index
    %c0_84 = arith.constant 0 : index
    %63 = vector.load %arg6[%c0_83, %c0_84] : memref<16x1xf32, #tpu.memory_space<vmem>>, vector<16x1xf32>
    %64 = vector.broadcast %63 : vector<16x1xf32> to vector<16x128xf32>
    %65 = arith.addf %62, %64 : vector<16x128xf32>
    %c0_85 = arith.constant 0 : index
    %c48_86 = arith.constant 48 : index
    %c0_87 = arith.constant 0 : index
    %66 = vector.load %arg1[%c0_85, %c48_86, %c0_87] : memref<1x64x256xbf16, #tpu.memory_space<vmem>>, vector<1x16x128xbf16>
    %67 = vector.shape_cast %66 : vector<1x16x128xbf16> to vector<16x128xbf16>
    %c0_88 = arith.constant 0 : index
    %c0_89 = arith.constant 0 : index
    %68 = vector.load %arg7[%c0_88, %c0_89] : memref<16x16xbf16, #tpu.memory_space<vmem>>, vector<16x16xbf16>
    %cst_90 = arith.constant dense<0.000000e+00> : vector<16x128xf32>
    %69 = tpu.matmul %68, %67, %cst_90 {dimension_numbers = #tpu.dot_dimension_numbers<[1], [0], [0], [1], [0, 0, 1, 1], [], []>} : vector<16x16xbf16>, vector<16x128xbf16>, vector<16x128xf32> -> vector<16x128xf32>
    %70 = arith.addf %65, %69 : vector<16x128xf32>
    %c0_91 = arith.constant 0 : index
    %c0_92 = arith.constant 0 : index
    %71 = vector.load %arg8[%c0_91, %c0_92] : memref<16x1xf32, #tpu.memory_space<vmem>>, vector<16x1xf32>
    %72 = vector.broadcast %71 : vector<16x1xf32> to vector<16x128xf32>
    %73 = arith.addf %70, %72 : vector<16x128xf32>
    %c0_93 = arith.constant 0 : index
    %c0_94 = arith.constant 0 : index
    %c0_95 = arith.constant 0 : index
    %74 = vector.load %arg9[%c0_93, %c0_94, %c0_95] : memref<1x16x128xf32, #tpu.memory_space<vmem>>, vector<1x16x128xf32>
    %75 = vector.shape_cast %74 : vector<1x16x128xf32> to vector<16x128xf32>
    %76 = vector.shape_cast %73 : vector<16x128xf32> to vector<1x16x128xf32>
    tpu.vector_store %arg9[%c0_93, %c0_94, %c0_95], %76 {strides = array<i32>} : memref<1x16x128xf32, #tpu.memory_space<vmem>>, vector<1x16x128xf32>,
    return
  }
  func.func @transform_0(%arg0: i32) -> (i32, i32, i32) {
    %c0_i32 = arith.constant 0 : i32
    %c0_i32_0 = arith.constant 0 : i32
    %c0_i32_1 = arith.constant 0 : i32
    return %arg0, %c0_i32, %c0_i32_0 : i32, i32, i32
  }
  func.func @transform_1(%arg0: i32) -> (i32, i32) {
    %c0_i32 = arith.constant 0 : i32
    %c0_i32_0 = arith.constant 0 : i32
    %c0_i32_1 = arith.constant 0 : i32
    return %c0_i32, %c0_i32_0 : i32, i32
  }
  func.func @transform_2(%arg0: i32) -> (i32, i32) {
    %c0_i32 = arith.constant 0 : i32
    %c0_i32_0 = arith.constant 0 : i32
    %c0_i32_1 = arith.constant 0 : i32
    return %c0_i32, %c0_i32_0 : i32, i32
  }
  func.func @transform_3(%arg0: i32) -> (i32, i32) {
    %c0_i32 = arith.constant 0 : i32
    %c0_i32_0 = arith.constant 0 : i32
    %c0_i32_1 = arith.constant 0 : i32
    return %c0_i32, %c0_i32_0 : i32, i32
  }
  func.func @transform_4(%arg0: i32) -> (i32, i32) {
    %c0_i32 = arith.constant 0 : i32
    %c0_i32_0 = arith.constant 0 : i32
    %c0_i32_1 = arith.constant 0 : i32
    return %c0_i32, %c0_i32_0 : i32, i32
  }
  func.func @transform_5(%arg0: i32) -> (i32, i32) {
    %c0_i32 = arith.constant 0 : i32
    %c0_i32_0 = arith.constant 0 : i32
    %c0_i32_1 = arith.constant 0 : i32
    return %c0_i32, %c0_i32_0 : i32, i32
  }
  func.func @transform_6(%arg0: i32) -> (i32, i32) {
    %c0_i32 = arith.constant 0 : i32
    %c0_i32_0 = arith.constant 0 : i32
    %c0_i32_1 = arith.constant 0 : i32
    return %c0_i32, %c0_i32_0 : i32, i32
  }
  func.func @transform_7(%arg0: i32) -> (i32, i32) {
    %c0_i32 = arith.constant 0 : i32
    %c0_i32_0 = arith.constant 0 : i32
    %c0_i32_1 = arith.constant 0 : i32
    return %c0_i32, %c0_i32_0 : i32, i32
  }
  func.func @transform_8(%arg0: i32) -> (i32, i32, i32) {
    %c0_i32 = arith.constant 0 : i32
    %c0_i32_0 = arith.constant 0 : i32
    %c0_i32_1 = arith.constant 0 : i32
    return %arg0, %c0_i32, %c0_i32_0 : i32, i32, i32
  }
}

</mosaic_0001>

<bundles_post_ra>
// kernel: _lambda_.1
= control target key start
LH: loop header
LB: loop body
LE: loop exit
PB: predicated region body
PF: predicated region fallthrough
CT: control target
= control target key end

     0   :  { %s986_s27 = smov 0   ;;  %s1105_s0 = inlined_call_operand.vmem [shape: bf16[2,64,256], index: 0, kind: input, shape index: {}]   ;;  %s1106_s1 = inlined_call_operand.vmem [shape: f32[1,128], index: 1, kind: input, shape index: {}]   ;;  %s1107_s2 = inlined_call_operand.vmem [shape: bf16[16,144], index: 2, kind: input, shape index: {}]   ;;  %s1108_s3 = inlined_call_operand.vmem [shape: f32[16,1], index: 3, kind: input, shape index: {}]   ;;  %s1109_s4 = inlined_call_operand.vmem [shape: bf16[16,144], index: 4, kind: input, shape index: {}]   ;;  %s1110_s5 = inlined_call_operand.vmem [shape: f32[16,1], index: 5, kind: input, shape index: {}]   ;;  %s1111_s6 = inlined_call_operand.vmem [shape: bf16[16,16], index: 6, kind: input, shape index: {}]   ;;  %s1112_s7 = inlined_call_operand.vmem [shape: f32[16,1], index: 7, kind: input, shape index: {}]   ;;  %s1113_s8 = inlined_call_operand.vmem [shape: f32[2,16,128], index: 8, kind: output, shape index: {}]  }
   0x1 LB: > { %s833_s28 = sadd.s32 4294967295, %s927_s27   ;;  %p837_p0 = scmp.ge.s32.totalorder %s927_s27, 1  ;;  %s927_s27 = sphi %s986_s27, %s18_s27  }
   0x2   : > { %p262_p1 = scmp.lt.s32.totalorder %s927_s27, 3 }
   0x4   : > { %p263_p2 = pnand %p837_p0, %p262_p1 }
   0x5   : > { %p296_p3 = scmp.lt.s32.totalorder (!%p263_p2), %s833_s28, 1  ;;  %v929_v0 = vmov (!%p263_p2), 0   ;;  %s930_s11 = smov (!%p263_p2), 127   ;;  %v915_v9 = vld [vmem:[%s1107_s2 + $0x4] ss:$8 sps:$4 sm:$0xff] (!%p263_p2)   ;;  %vm463_vm0 = vcmask (!%p263_p2), 130048  }
   0x6   : > { %266 = sbr.rel (%p263_p2) target bundleno = 878 (0x36e), region = 52  ;;  %467 = vmatprep.subr.bf16.mxu0 (!%p263_p2), %v929_v0  ;;  %510 = vst [vmem:[#allocation3] sm:$0xff] (!%p263_p2), %v929_v0  ;;  %511 = vst [vmem:[#allocation3 + $0x8] sm:$0xff] (!%p263_p2), %v929_v0  ;;  %898 = vset.pattern.permute.xlu0 (!%p263_p2), %v929_v0  ;;  %s931_s12 = smov (!%p263_p2), 118   ;;  %v442_v10 = vld [vmem:[%s1108_s3] sm:$0xff] (!%p263_p2)  ;;  %v443_v11 = vld [vmem:[%s1108_s3 + $0x8] sm:$0xff] (!%p263_p2) }
   0x7   : > { %899 = vset.pattern.permute.xlu1 (!%p263_p2), %v929_v0  ;;  %660 = vmatprep.subr.bf16.mxu1 (!%p263_p2), %v929_v0  ;;  %s932_s13 = smov (!%p263_p2), 117   ;;  %vm339_vm1 = vcmask (!%p263_p2), 1039360   ;;  %vm392_vm2 = vcmask (!%p263_p2), 965632   ;;  %vm427_vm3 = vcmask (!%p263_p2), 957440   ;;  %v913_v29 = vld [vmem:[%s1107_s2] ss:$8 sps:$4 sm:$0xff] (!%p263_p2)  }
   0x8   : > { %858 = vmatprep.mubr.msk.bf16.mxu0 (!%p263_p2), %vm463_vm0, %v915_v9  ;;  %v859_v39 = vld [vmem:[%s1106_s1] ss:$0 sm:$0xff] (!%p263_p2)  ;;  %s933_s24 = smov (!%p263_p2), 11   ;;  %vm526_vm4 = vcmask (!%p263_p2), 1047640   ;;  %vm528_vm5 = vcmask (!%p263_p2), 89088   ;;  %s934_s25 = smov (!%p263_p2), 126  }
   0x9   : > { %v935_v48 = vmov (!%p263_p2), 0.0   ;;  %s936_s26 = smov (!%p263_p2), 116   ;;  %v919_v49 = vld [vmem:[%s1109_s4 + $0x4] ss:$8 sps:$4 sm:$0xff] (!%p263_p2)   ;;  %vm937_vm6 = vmmov (!%p263_p2), 0   ;;  %vm551_vm7 = vcmask (!%p263_p2), 1031168  }
   0xa   : > { %v920_v50 = vld [vmem:[%s1111_s6] sm:$0xff] (!%p263_p2)   ;;  %862 = vmatprep.mubr.msk.bf16.mxu1 (!%p263_p2), %vm463_vm0, %v919_v49  ;;  %v637_v51 = vld [vmem:[%s1110_s5 + $0x8] sm:$0xff] (!%p263_p2)  ;;  %vm585_vm8 = vcmask (!%p263_p2), 949248   ;;  %vm597_vm9 = vcmask (!%p263_p2), 883712   ;;  %vm609_vm10 = vcmask (!%p263_p2), 875520   ;;  %vm621_vm11 = vcmask (!%p263_p2), 867328  }
   0xb   : > { %v636_v52 = vld [vmem:[%s1110_s5] sm:$0xff] (!%p263_p2)  ;;  %v763_v53 = vld [vmem:[%s1112_s7 + $0x8] sm:$0xff] (!%p263_p2) }
   0xc   : > { %v762_v54 = vld [vmem:[%s1112_s7] sm:$0xff] (!%p263_p2) }
   0xd   : > { %s1115_s28 = smov (!%p296_p3, %s833_s28), 1 }
   0xe   : > { %s868_s29 = sshll.u32 %s1115_s28, 6 }
   0xf   : > { %s1006_s10 = scalar_lea.vmem %s1105_s0, %s868_s29 }
  0x10   : > { %v900_v1 = vld [vmem:[%s1006_s10] ss:$8 sps:$4 sm:$0xff]   ;;  %v902_v2 = vld [vmem:[%s1006_s10 + $0x4] ss:$8 sps:$4 sm:$0xff]   ;;  %v910_v6 = vld [vmem:[%s1006_s10 + $0x10] ss:$8 sps:$4 sm:$0xff]  }
  0x11   : > { %335 = vrot.lane.b32.xlu0 %v900_v1, %s930_s11  ;;  %v903_v3 = vld [vmem:[%s1006_s10 + $0x20] ss:$8 sps:$4 sm:$0xff]   ;;  %v905_v4 = vld [vmem:[%s1006_s10 + $0x24] ss:$8 sps:$4 sm:$0xff]   ;;  %v908_v7 = vld [vmem:[%s1006_s10 + $0x10] ss:$8 sps:$4 sm:$0xff]  }
  0x12   : > { %371 = vrot.lane.b32.xlu1 %v903_v3, %s930_s11  ;;  %v909_v5 = vld [vmem:[%s1006_s10] ss:$8 sps:$4 sm:$0xff]   ;;  %v906_v8 = vld [vmem:[%s1006_s10 + $0x14] ss:$8 sps:$4 sm:$0xff]   ;;  %v912_v18 = vld [vmem:[%s1006_s10 + $0x30] ss:$8 sps:$4 sm:$0xff]  }
  0x13   : > { %468 = vmatpush1.bf16.msra.mxu0 %v909_v5  ;;  %v911_v16 = vld [vmem:[%s1006_s10 + $0x20] ss:$8 sps:$4 sm:$0xff]   ;;  %v916_v47 = vld [vmem:[%s1006_s10 + $0x30] ss:$8 sps:$4 sm:$0xff]   ;;  %s938_s10 = smov 108  }
  0x14   : > { %469 = vmatprep.subr.bf16.mxu0 %v929_v0 }
  0x15   : > { %337 = vrot.lane.b32.xlu0 %v902_v2, %s930_s11 }
  0x16   : > { %373 = vrot.lane.b32.xlu1 %v905_v4, %s930_s11 }
  0x17   : > { %470 = vmatpush1.bf16.msra.mxu0 %v910_v6 }
  0x18   : > { %471 = vmatprep.subr.bf16.mxu0 %v929_v0 }
  0x19   : > { %388 = vrot.lane.b32.xlu0 %v900_v1, %s931_s12 }
  0x1a   : > { %390 = vrot.lane.b32.xlu1 %v902_v2, %s931_s12 }
  0x1d   : > { %406 = vrot.lane.b32.xlu0 %v908_v7, %s931_s12 }
  0x1e   : > { %408 = vrot.lane.b32.xlu1 %v906_v8, %s931_s12 }
  0x21   : > { %423 = vrot.lane.b32.xlu0 %v900_v1, %s932_s13 }
  0x22   : > { %425 = vrot.lane.b32.xlu1 %v902_v2, %s932_s13 }
  0x25   : > { %446 = vperm.xlu0 %898, %v442_v10  }
  0x26   : > { %451 = vperm.xlu1 %899, %v443_v11  }
  0x83   : > { %v336_v12 = vpop.permute.xlu0 %335 }
  0x84   : > { %v372_v13 = vpop.permute.xlu1 %371 }
  0x87   : > { %v338_v14 = vpop.permute.xlu0 %337 }
  0x88   : > { %v340_v15 = vsel %vm339_vm1, %v336_v12, %v338_v14  ;;  %v374_v17 = vpop.permute.xlu1 %373 }
  0x89   : > { %472 = vmatpush1.bf16.msra.mxu0 %v340_v15  ;;  %v375_v21 = vsel %vm339_vm1, %v372_v13, %v374_v17 }
  0x8a   : > { %473 = vmatprep.subr.bf16.mxu0 %v929_v0 }
  0x8b   : > { %v389_v20 = vpop.permute.xlu0 %388 }
  0x8c   : > { %v391_v19 = vpop.permute.xlu1 %390 }
  0x8d   : > { %474 = vmatpush1.bf16.msra.mxu0 %v911_v16  ;;  %v393_v24 = vsel %vm392_vm2, %v389_v20, %v391_v19  ;;  %v917_v16 = vld [vmem:[%s1109_s4] ss:$8 sps:$4 sm:$0xff]  }
  0x8e   : > { %475 = vmatprep.subr.bf16.mxu0 %v929_v0 }
  0x8f   : > { %v407_v23 = vpop.permute.xlu0 %406 }
  0x90   : > { %v409_v22 = vpop.permute.xlu1 %408 }
  0x91   : > { %476 = vmatpush1.bf16.msra.mxu0 %v912_v18  ;;  %v410_v25 = vsel %vm392_vm2, %v407_v23, %v409_v22 }
  0x92   : > { %477 = vmatprep.subr.bf16.mxu0 %v929_v0 }
  0x93   : > { %v424_v27 = vpop.permute.xlu0 %423 }
  0x94   : > { %v426_v26 = vpop.permute.xlu1 %425 }
  0x95   : > { %478 = vmatpush1.bf16.msra.mxu0 %v375_v21  ;;  %v428_v28 = vsel %vm427_vm3, %v424_v27, %v426_v26 }
  0x96   : > { %479 = vmatprep.subr.bf16.mxu0 %v929_v0 }
  0x99   : > { %480 = vmatpush1.bf16.msra.mxu0 %v393_v24 }
  0x9a   : > { %481 = vmatprep.subr.bf16.mxu0 %v929_v0 }
  0x9d   : > { %482 = vmatpush1.bf16.msra.mxu0 %v410_v25 }
  0x9e   : > { %483 = vmatprep.subr.bf16.mxu0 %v929_v0 }
  0xa1   : > { %484 = vmatpush1.bf16.msra.mxu0 %v428_v28 }
  0xa2   : > { %872 = vmatprep.subr.bf16.mxu0 %v935_v48 }
  0xa4   : > { %500 = vmatmul.mubr.bf16.vlgmr.msra.gmra.mrb[0].mxu0 %v913_v29  ;;  %v447_v30 = vpop.permute.xlu0 %446 }
  0xa5   : > { %v452_v32 = vpop.permute.xlu1 %451  ;;  %873 = vmatpush3.bf16.msra.mxu0 %v916_v47  ;;  %874 = vmatprep.mubr.msk.bf16.mxu0 %vm937_vm6, %v935_v48 }
  0xac   : > { %875 = vmatmul.mubr.msk.bf16.vlgmr.msra.gmra.mrb[4].mxu0 %vm463_vm0, %v920_v50 }
 0x177   : > { %v501_v31 = vpop.f32.mrb[0].mxu0 }
 0x178   : > { %v502_v33 = vadd.f32 %v501_v31, %v447_v30  ;;  %v503_v34 = vpop.f32.mrb[1].mxu0 }
 0x179   : > { %v504_v35 = vpop.f32.mrb[2].mxu0 }
 0x17a   : > { %v508_v36 = vmax.f32 %v502_v33, 0.0  ;;  %v505_v37 = vadd.f32 %v504_v35, %v452_v32  ;;  %v506_v38 = vpop.f32.mrb[3].mxu0 }
 0x17c   : > { %v509_v40 = vmax.f32 %v505_v37, 0.0  ;;  %v519_v41 = vmul.f32 %v859_v39, %v508_v36 }
 0x17e   : > { %v520_v42 = vmul.f32 %v859_v39, %v509_v40 }
 0x17f   : > { %v753_v17 = vpop.f32.mrb[4].mxu0 }
 0x180   : > { %v521_v43 = vpack.c.bf16 %v520_v42, %v519_v41  ;;  %v876_v18 = vpop.f32.mrb[5].mxu0 }
 0x181   : > { %v756_v19 = vpop.f32.mrb[6].mxu0 }
 0x182   : > { %523 = vrot.lane.b32.xlu1 %v521_v43, %s933_s24  ;;  %v877_v20 = vpop.f32.mrb[7].mxu0  ;;  %s869_s24 = sshll.u32 %s1115_s28, 4 }
 0x183   : > { %s305_s29 = scalar_lea.vmem %s1113_s8, %s869_s24 }
 0x1f4   : > { %v524_v44 = vpop.permute.xlu1 %523 }
 0x1f5   : > { %527 = vst.msk [vmem:[#allocation3] sm:$0xff] %vm526_vm4, %v524_v44 }
 0x1f6   : > { %529 = vst.msk [vmem:[#allocation3 + $0x8] sm:$0xff] %vm528_vm5, %v524_v44 }
 0x1fc   : > { %v532_v46 = vld [vmem:[#allocation3] sm:$0xff] }
 0x1fd   : > { %v533_v45 = vld [vmem:[#allocation3 + $0x8] sm:$0xff]  ;;  %536 = vrot.lane.b32.xlu0 %v532_v46, %s930_s11  ;;  %661 = vmatpush1.bf16.msra.mxu1 %v532_v46 }
 0x1fe   : > { %538 = vrot.lane.b32.xlu1 %v533_v45, %s930_s11  ;;  %662 = vmatprep.subr.bf16.mxu1 %v929_v0 }
 0x201   : > { %547 = vrot.lane.b32.xlu0 %v532_v46, %s934_s25 }
 0x202   : > { %549 = vrot.lane.b32.xlu1 %v533_v45, %s934_s25 }
 0x205   : > { %559 = vrot.lane.b32.xlu0 %v532_v46, %s931_s12 }
 0x206   : > { %561 = vrot.lane.b32.xlu1 %v533_v45, %s931_s12  ;;  %s939_s12 = smov 107  }
 0x209   : > { %570 = vrot.lane.b32.xlu0 %v532_v46, %s932_s13 }
 0x20a   : > { %572 = vrot.lane.b32.xlu1 %v533_v45, %s932_s13  ;;  %s940_s13 = smov 106  }
 0x20d   : > { %581 = vrot.lane.b32.xlu0 %v532_v46, %s936_s26 }
 0x20e   : > { %583 = vrot.lane.b32.xlu1 %v533_v45, %s936_s26 }
 0x211   : > { %593 = vrot.lane.b32.xlu0 %v532_v46, %s938_s10 }
 0x212   : > { %595 = vrot.lane.b32.xlu1 %v533_v45, %s938_s10 }
 0x215   : > { %605 = vrot.lane.b32.xlu0 %v532_v46, %s939_s12 }
 0x216   : > { %607 = vrot.lane.b32.xlu1 %v533_v45, %s939_s12 }
 0x219   : > { %617 = vrot.lane.b32.xlu0 %v532_v46, %s940_s13 }
 0x21a   : > { %619 = vrot.lane.b32.xlu1 %v533_v45, %s940_s13 }
 0x21d   : > { %640 = vperm.xlu0 %898, %v636_v52  }
 0x21e   : > { %645 = vperm.xlu1 %899, %v637_v51  }
 0x221   : > { %766 = vperm.xlu0 %898, %v762_v54  }
 0x222   : > { %771 = vperm.xlu1 %899, %v763_v53  }
 0x26f   : > { %v537_v56 = vpop.permute.xlu0 %536 }
 0x270   : > { %v539_v55 = vpop.permute.xlu1 %538 }
 0x271   : > { %v540_v57 = vsel %vm339_vm1, %v537_v56, %v539_v55 }
 0x272   : > { %663 = vmatpush1.bf16.msra.mxu1 %v540_v57 }
 0x273   : > { %664 = vmatprep.subr.bf16.mxu1 %v929_v0  ;;  %v548_v59 = vpop.permute.xlu0 %547 }
 0x274   : > { %v550_v58 = vpop.permute.xlu1 %549 }
 0x275   : > { %v552_v60 = vsel %vm551_vm7, %v548_v59, %v550_v58 }
 0x276   : > { %665 = vmatpush1.bf16.msra.mxu1 %v552_v60 }
 0x277   : > { %666 = vmatprep.subr.bf16.mxu1 %v929_v0  ;;  %v560_v62 = vpop.permute.xlu0 %559 }
 0x278   : > { %v562_v61 = vpop.permute.xlu1 %561 }
 0x279   : > { %v563_v63 = vsel %vm392_vm2, %v560_v62, %v562_v61 }
 0x27a   : > { %667 = vmatpush1.bf16.msra.mxu1 %v563_v63 }
 0x27b   : > { %668 = vmatprep.subr.bf16.mxu1 %v929_v0  ;;  %v571_v2 = vpop.permute.xlu0 %570 }
 0x27c   : > { %v573_v1 = vpop.permute.xlu1 %572 }
 0x27d   : > { %v574_v3 = vsel %vm427_vm3, %v571_v2, %v573_v1 }
 0x27e   : > { %669 = vmatpush1.bf16.msra.mxu1 %v574_v3 }
 0x27f   : > { %670 = vmatprep.subr.bf16.mxu1 %v929_v0  ;;  %v582_v5 = vpop.permute.xlu0 %581 }
 0x280   : > { %v584_v4 = vpop.permute.xlu1 %583 }
 0x281   : > { %v586_v6 = vsel %vm585_vm8, %v582_v5, %v584_v4 }
 0x282   : > { %671 = vmatpush1.bf16.msra.mxu1 %v586_v6 }
 0x283   : > { %672 = vmatprep.subr.bf16.mxu1 %v929_v0  ;;  %v594_v8 = vpop.permute.xlu0 %593 }
 0x284   : > { %v596_v7 = vpop.permute.xlu1 %595 }
 0x285   : > { %v598_v9 = vsel %vm597_vm9, %v594_v8, %v596_v7 }
 0x286   : > { %673 = vmatpush1.bf16.msra.mxu1 %v598_v9 }
 0x287   : > { %674 = vmatprep.subr.bf16.mxu1 %v929_v0  ;;  %v606_v11 = vpop.permute.xlu0 %605 }
 0x288   : > { %v608_v10 = vpop.permute.xlu1 %607 }
 0x289   : > { %v610_v12 = vsel %vm609_vm10, %v606_v11, %v608_v10 }
 0x28a   : > { %675 = vmatpush1.bf16.msra.mxu1 %v610_v12 }
 0x28b   : > { %676 = vmatprep.subr.bf16.mxu1 %v929_v0  ;;  %v618_v14 = vpop.permute.xlu0 %617 }
 0x28c   : > { %v620_v13 = vpop.permute.xlu1 %619 }
 0x28d   : > { %v622_v15 = vsel %vm621_vm11, %v618_v14, %v620_v13 }
 0x28e   : > { %677 = vmatpush1.bf16.msra.mxu1 %v622_v15 }
 0x291   : > { %693 = vmatmul.mubr.bf16.vlgmr.msra.gmra.mrb[0].mxu1 %v917_v16 }
 0x29c   : > { %v641_v21 = vpop.permute.xlu0 %640 }
 0x29d   : > { %v646_v22 = vpop.permute.xlu1 %645 }
 0x2a0   : > { %v767_v29 = vpop.permute.xlu0 %766 }
 0x2a1   : > { %v772_v32 = vpop.permute.xlu1 %771 }
 0x364   : > { %v694_v23 = vpop.f32.mrb[0].mxu1 }
 0x365   : > { %v695_v24 = vadd.f32 %v694_v23, %v641_v21  ;;  %v696_v25 = vpop.f32.mrb[1].mxu1 }
 0x366   : > { %v697_v0 = vpop.f32.mrb[2].mxu1 }
 0x367   : > { %v760_v26 = vadd.f32 %v753_v17, %v695_v24  ;;  %v698_v27 = vadd.f32 %v697_v0, %v646_v22  ;;  %v699_v28 = vpop.f32.mrb[3].mxu1 }
 0x369   : > { %v774_v30 = vadd.f32 %v767_v29, %v760_v26  ;;  %v761_v31 = vadd.f32 %v756_v19, %v698_v27 }
 0x36b   : > { %776 = vst [vmem:[%s305_s29] sm:$0xff] %v774_v30  ;;  %v775_v33 = vadd.f32 %v772_v32, %v761_v31 }
 0x36d   : > { %777 = vst [vmem:[%s305_s29 + $0x8] sm:$0xff] %v775_v33 }
 0x36e PF: > { %s18_s27 = sadd.s32 1, %s927_s27  }
 0x36f   : > { %p15_p4 = scmp.ge.s32.totalorder %s18_s27, 4  }
 0x371   :  { %17 = sbr.rel (!%p15_p4) target bundleno = 1 (0x1), region = 82 }

</bundles_post_ra>
